<compile_context>
chip_gen: v6e
topology: v6e:2x2x1
jax: 0.10.0
libtpu: 0.0.40
codegen_flags: <defaults>
</compile_context>

<pallas_src>
import math

import jax
import jax.numpy as jnp
from jax import lax
from jax.experimental import pallas as pl
from jax.experimental.pallas import tpu as pltpu


def _round_up(x, m):
    return (x + m - 1) // m * m


# Keep double-buffered tiles comfortably under the 32 MiB default scoped VMEM
# (valid on v5e/v6e/v7x), so no vmem_limit override is needed.
_VMEM_TILE_BUDGET = 20 << 20


def _pick_batch_tiling(B, H, P, in_bytes=4, out_bytes=4, w_bytes=2, cap=2048):
    """Return (tb, B_pad): large batch tiles (few grid steps), minimal batch padding."""
    B8 = _round_up(max(B, 1), 8)
    per_row = 2 * (H * in_bytes + P * out_bytes)   # double-buffered x + out tiles
    resident = 2 * H * P * w_bytes                 # double-buffered weight block
    tb_max = max(8, ((_VMEM_TILE_BUDGET - resident) // per_row) // 8 * 8)
    tb_max = min(tb_max, cap)
    if B8 <= tb_max:
        return B8, B8                              # single tile per modality
    n_tiles = -(-B8 // tb_max)                     # ceil
    tb = _round_up(-(-B8 // n_tiles), 8)           # <= tb_max (tb_max is a multiple of 8)
    return tb, n_tiles * tb


def fused_head_kernel(scale_ref, x_ref, wt_ref, o_ref):
    """Fused projection -> L2 normalize -> temperature scale for one (modality, batch tile).

    scale_ref: SMEM (M,)      f32   per-modality scale (exp(logit_scale) or 1.0)
    x_ref:     VMEM (tb, H)   f32   pooled encoder outputs (batch tile)
    wt_ref:    VMEM (H, P)    bf16  pre-transposed projection weight
    o_ref:     VMEM (tb, P)   f32
    """
    m = pl.program_id(0)
    # Cast to bf16 in-kernel (saves a standalone HBM cast pass); MXU with f32 accumulation.
    x = x_ref[...].astype(jnp.bfloat16)
    y = jnp.dot(x, wt_ref[...], preferred_element_type=jnp.float32)
    sq = jnp.sum(y * y, axis=-1, keepdims=True)
    # rsqrt on the EUP slot; guard zero-norm (padded) rows -> 0 instead of NaN, and fold
    # the scalar temperature into the same [tb, 1] column op.
    inv = jnp.where(sq > 0.0, lax.rsqrt(sq), 0.0) * scale_ref[m]
    o_ref[...] = (y * inv).astype(o_ref.dtype)


def languagebind_fused_head(pooled_stacked, wt_stacked, scales, *, batch_tile):
    """pooled_stacked: [M, B_pad, H] f32; wt_stacked: [M, H, P] bf16; scales: [M] f32."""
    M, B_pad, H = pooled_stacked.shape
    P = wt_stacked.shape[-1]
    tb = batch_tile
    grid = (M, B_pad // tb)
    cost = pl.CostEstimate(
        flops=2 * M * B_pad * H * P,
        transcendentals=M * B_pad,
        bytes_accessed=M * B_pad * H * 4 + M * H * P * 2 + M * B_pad * P * 4,
    )
    return pl.pallas_call(
        fused_head_kernel,
        out_shape=jax.ShapeDtypeStruct((M, B_pad, P), jnp.float32),
        grid_spec=pltpu.PrefetchScalarGridSpec(
            num_scalar_prefetch=1,          # scales -> SMEM, passed to index_maps + kernel
            grid=grid,
            in_specs=[
                # Modality dim squeezed out (None); batch tiled along the inner grid axis.
                pl.BlockSpec((None, tb, H), lambda m, b, scales: (m, b, 0)),
                # Weight block depends only on modality -> stays resident over the batch axis.
                pl.BlockSpec((None, H, P), lambda m, b, scales: (m, 0, 0)),
            ],
            # Unpadded P: block last dim equals the full array dim (legal), so the HBM
            # writeback contains only valid columns.
            out_specs=pl.BlockSpec((None, tb, P), lambda m, b, scales: (m, b, 0)),
        ),
        compiler_params=pltpu.CompilerParams(
            dimension_semantics=("parallel", "parallel")),
        cost_estimate=cost,
    )(scales, pooled_stacked, wt_stacked)


def _forward_impl(pooled_tuple, wt_stacked, scales):
    """Jitted end-to-end forward: stack -> pad -> fused kernel -> per-modality slices."""
    pooled = jnp.stack(pooled_tuple)                 # [M, B, H] f32
    M, B, H = pooled.shape
    P = wt_stacked.shape[-1]
    tb, B_pad = _pick_batch_tiling(B, H, P)
    if B_pad != B:
        pooled = jnp.pad(pooled, ((0, 0), (0, B_pad - B), (0, 0)))
    out = languagebind_fused_head(pooled, wt_stacked, scales, batch_tile=tb)
    if B_pad != B:
        out = out[:, :B, :]
    return tuple(out[i] for i in range(M))           # fused post-slice under jit


class LanguageBindPallas:
    """Pallas re-implementation of LanguageBind.forward (all projection heads fused in one kernel).

    TODO(synk): the pretrained CLIP vision/text encoders (model.vision_model /
    model.text_model loaded from checkpoints) have no in-script equivalent; each
    modality encoder is represented by its pooled output, taken directly as input.
    Assumes all modalities in a call share the same pooled batch size.
    """

    def __init__(self, clip_type, hidden=32, proj_dim=64, use_temp=True, seed=0):
        self.use_temp = use_temp
        self.hidden = hidden
        self.proj_dim = proj_dim
        self.modalities = list(clip_type.keys()) + ["language"]

        key = jax.random.PRNGKey(seed)
        self.proj = {}            # PyTorch Linear layout [P, H], f32 (reference truth)
        self.logit_scale = {}
        self._wt_prepped = {}     # [H, P] bf16, pre-transposed ONCE
        for m in self.modalities:
            key, k = jax.random.split(key)
            # nn.Linear(hidden, proj_dim, bias=False): weight shape [proj_dim, hidden]
            self.proj[m] = jax.random.normal(k, (proj_dim, hidden), jnp.float32) * (
                1.0 / math.sqrt(hidden))
            if m != "language":
                # CLIP default logit_scale init: log(1/0.07)
                self.logit_scale[m] = jnp.float32(math.log(1.0 / 0.07))
            self._wt_prepped[m] = jnp.transpose(self.proj[m]).astype(jnp.bfloat16)
        self._wt_stacked_all = jnp.stack(
            [self._wt_prepped[m] for m in self.modalities])                # [M, H, P]

        # Per-modality temperature scales, precomputed once.
        self._scale = {}
        for m in self.modalities:
            if self.use_temp and m != "language":
                self._scale[m] = jnp.exp(self.logit_scale[m])
            else:
                self._scale[m] = jnp.float32(1.0)

        # One jitted dispatch for the whole forward: the stack/pad pre-fusion, the
        # pallas custom call, and the per-modality slices fuse; collapses the
        # per-op dispatch overhead that dominates at small shapes.
        self._forward_jit = jax.jit(_forward_impl)

    def __call__(self, inputs):
        keys = list(inputs.keys())
        pooled = tuple(inputs[m] for m in keys)                 # each [B, H] f32
        if keys == self.modalities:
            wt_stacked = self._wt_stacked_all
        else:
            wt_stacked = jnp.stack([self._wt_prepped[m] for m in keys])
        scales = jnp.stack([self._scale[m] for m in keys]).astype(jnp.float32)
        outs = self._forward_jit(pooled, wt_stacked, scales)
        return dict(zip(keys, outs))


def _reference_head(pooled, proj_weight, scale):
    y = pooled @ proj_weight.T
    y = y / jnp.linalg.norm(y, axis=-1, keepdims=True)
    return y * scale


if __name__ == "__main__":
    clip_type = {"image": "LanguageBind_Image",
                 "video": "LanguageBind_Video_FT",
                 "thermal": "LanguageBind_Thermal"}
    B, H, P = 2, 32, 64

    model = LanguageBindPallas(clip_type, hidden=H, proj_dim=P, use_temp=True, seed=0)

    key = jax.random.PRNGKey(0)
    inputs = {}
    for m in model.modalities:   # image, video, thermal, language
        key, k = jax.random.split(key)
        inputs[m] = jax.random.normal(k, (B, H), jnp.float32)  # pooled encoder outputs

    outputs = model(inputs)
    outputs = jax.tree_util.tree_map(jax.block_until_ready, outputs)

    # Sanity-check against a pure-JAX f32 reference of the same math.
    ok = True
    for m, pooled in inputs.items():
        scale = (jnp.exp(model.logit_scale[m])
                 if (model.use_temp and m != "language") else jnp.float32(1.0))
        ref = _reference_head(pooled, model.proj[m], scale)
        # bf16 MXU inputs with f32 accumulation -> slightly loosened tolerance vs pure f32.
        if not jnp.allclose(outputs[m], ref, atol=5e-2, rtol=5e-2):
            ok = False

    assert ok, "Pallas output mismatch vs reference"
    print("KERNEL_OK")
</pallas_src>

<mosaic_0001>
module attributes {stable_mosaic.version = 11 : i64} {
  func.func @fused_head_kernel(%arg0: i32, %arg1: i32, %arg2: memref<4xf32, #tpu.memory_space<smem>>, %arg3: memref<1x8x32xf32, #tpu.memory_space<vmem>>, %arg4: memref<1x32x64xbf16, #tpu.memory_space<vmem>>, %arg5: memref<1x8x64xf32, #tpu.memory_space<vmem>>) attributes {dimension_semantics = [#tpu.dimension_semantics<parallel>, #tpu.dimension_semantics<parallel>], iteration_bounds = array<i64: 4, 1>, scalar_prefetch = 1 : i64, scratch_operands = 0 : i64, tpu.core_type = #tpu.core_type<tc>, window_params = [{transform_indices = @transform_0, window_bounds = array<i64: 1, 8, 32>}, {transform_indices = @transform_1, window_bounds = array<i64: 1, 32, 64>}, {transform_indices = @transform_2, window_bounds = array<i64: 1, 8, 64>}]} {
    %c0 = arith.constant 0 : index
    %c0_0 = arith.constant 0 : index
    %c0_1 = arith.constant 0 : index
    %0 = vector.load %arg3[%c0, %c0_0, %c0_1] : memref<1x8x32xf32, #tpu.memory_space<vmem>>, vector<1x8x32xf32>
    %1 = vector.shape_cast %0 : vector<1x8x32xf32> to vector<8x32xf32>
    %2 = arith.truncf %1 : vector<8x32xf32> to vector<8x32xbf16>
    %c0_2 = arith.constant 0 : index
    %c0_3 = arith.constant 0 : index
    %c0_4 = arith.constant 0 : index
    %3 = vector.load %arg4[%c0_2, %c0_3, %c0_4] : memref<1x32x64xbf16, #tpu.memory_space<vmem>>, vector<1x32x64xbf16>
    %4 = vector.shape_cast %3 : vector<1x32x64xbf16> to vector<32x64xbf16>
    %cst = arith.constant dense<0.000000e+00> : vector<8x64xf32>
    %5 = tpu.matmul %2, %4, %cst {dimension_numbers = #tpu.dot_dimension_numbers<[1], [0], [0], [1], [0, 0, 1, 1], [], []>} : vector<8x32xbf16>, vector<32x64xbf16>, vector<8x64xf32> -> vector<8x64xf32>
    %6 = arith.mulf %5, %5 : vector<8x64xf32>
    %cst_5 = arith.constant dense<0.000000e+00> : vector<8xf32>
    %7 = vector.multi_reduction <add>, %6, %cst_5 [1] : vector<8x64xf32> to vector<8xf32>
    %8 = vector.shape_cast %7 : vector<8xf32> to vector<8x1xf32>
    %cst_6 = arith.constant 0.000000e+00 : f32
    %9 = vector.broadcast %cst_6 : f32 to vector<8x1xf32>
    %10 = arith.cmpf ogt, %8, %9 : vector<8x1xf32>
    %11 = math.rsqrt %8 : vector<8x1xf32>
    %cst_7 = arith.constant 0.000000e+00 : f32
    %12 = vector.broadcast %cst_7 : f32 to vector<8x1xf32>
    %13 = arith.select %10, %11, %12 : vector<8x1xi1>, vector<8x1xf32>
    %14 = arith.index_cast %arg0 : i32 to index
    %15 = memref.load %arg2[%14] : memref<4xf32, #tpu.memory_space<smem>>
    %16 = vector.broadcast %15 : f32 to vector<8x1xf32>
    %17 = arith.mulf %13, %16 : vector<8x1xf32>
    %18 = vector.broadcast %17 : vector<8x1xf32> to vector<8x64xf32>
    %19 = arith.mulf %5, %18 : vector<8x64xf32>
    %c0_8 = arith.constant 0 : index
    %c0_9 = arith.constant 0 : index
    %c0_10 = arith.constant 0 : index
    %20 = vector.load %arg5[%c0_8, %c0_9, %c0_10] : memref<1x8x64xf32, #tpu.memory_space<vmem>>, vector<1x8x64xf32>
    %21 = vector.shape_cast %20 : vector<1x8x64xf32> to vector<8x64xf32>
    %22 = vector.shape_cast %19 : vector<8x64xf32> to vector<1x8x64xf32>
    tpu.vector_store %arg5[%c0_8, %c0_9, %c0_10], %22 {strides = array<i32>} : memref<1x8x64xf32, #tpu.memory_space<vmem>>, vector<1x8x64xf32>,
    return
  }
  func.func @transform_0(%arg0: i32, %arg1: i32, %arg2: memref<4xf32, #tpu.memory_space<smem>>) -> (i32, i32, i32) {
    %c0_i32 = arith.constant 0 : i32
    %c0_i32_0 = arith.constant 0 : i32
    return %arg0, %arg1, %c0_i32 : i32, i32, i32
  }
  func.func @transform_1(%arg0: i32, %arg1: i32, %arg2: memref<4xf32, #tpu.memory_space<smem>>) -> (i32, i32, i32) {
    %c0_i32 = arith.constant 0 : i32
    %c0_i32_0 = arith.constant 0 : i32
    %c0_i32_1 = arith.constant 0 : i32
    return %arg0, %c0_i32, %c0_i32_0 : i32, i32, i32
  }
  func.func @transform_2(%arg0: i32, %arg1: i32, %arg2: memref<4xf32, #tpu.memory_space<smem>>) -> (i32, i32, i32) {
    %c0_i32 = arith.constant 0 : i32
    %c0_i32_0 = arith.constant 0 : i32
    return %arg0, %arg1, %c0_i32 : i32, i32, i32
  }
}

</mosaic_0001>

<bundles_post_ra>
// kernel: _forward_impl.1
= control target key start
LH: loop header
LB: loop body
LE: loop exit
PB: predicated region body
PF: predicated region fallthrough
CT: control target
= control target key end

     0   :  { %s711_s0 = inlined_call_operand.vmem [shape: f32[4], index: 0, kind: input, shape index: {}]   ;;  %s712_s1 = inlined_call_operand.vmem [shape: f32[4,8,32], index: 1, kind: input, shape index: {}]   ;;  %s713_s2 = inlined_call_operand.hbm [shape: bf16[4,32,64], index: 2, kind: input, shape index: {}]   ;;  %s714_s3 = inlined_call_operand.vmem [shape: f32[4,8,64], index: 3, kind: output, shape index: {}]  }
   0x1   :  { %s8_s14 = sshll.u32 %s711_s0, 4  ;;  %s9_s14 = int_to_ptr.vmem [resolvable:$true] %s8_s14 }
   0x2   :  { %s483_s15 = scalar_lea.vmem %s9_s14, 16  ;;  %p488_p1 = scmp.lt.s32.totalorder %s9_s14, %s9_s14 }
   0x3   :  { %p484_p0 = scmp.ne.s32.totalorder %s9_s14, %s483_s15  ;;  %p489_p2 = scmp.lt.s32.totalorder %s483_s15, %s483_s15 }
   0x5   :  { %p490_p3 = por %p489_p2, %p488_p1 }
   0x7   :  { %p491_p4 = pnand %p490_p3, %p484_p0 }
   0x9   :  { %494 = shalt.err (!%p491_p4)  }
   0xa   :  { %s577_s16 = smov [#allocation3]  }
   0xb   :  { %11 = dma.vmem_to_smem %s9_s14, 16, %s577_s16, [#allocation2] }
   0xc   :  { %547 = dma.done.wait [#allocation2], 16 }
   0xd   :  { %548 = vsyncadd [#allocation2], 4294967280 }
   0xe   :  { %13 = sfence }
   0xf   :  { %14 = vsyncpa [#allocation5], 0 }
  0x10   :  { %16 = vsyncpa [#allocation5 + $0x1], 0  ;;  %s606_s17 = smov 0   ;;  %s608_s18 = smov 0  }
  0x11   :  { %s610_s0 = smov 0   ;;  %s612_s19 = smov 0  }
  0x12   :  { %s614_s20 = smov 0   ;;  %s616_s21 = smov 0  }
  0x13 LB: > { %s391_s22 = sadd.s32 4294967295, %s575_s21   ;;  %s34_s23 = sadd.s32 1, %s571_s20  ;;  %s575_s21 = sphi %s616_s21, %s22_s21   ;;  %s571_s20 = sphi %s614_s20, %s722_s20   ;;  %s567_s19 = sphi %s612_s19, %s721_s19   ;;  %s563_s0 = sphi %s610_s0, %s720_s0   ;;  %s559_s18 = sphi %s608_s18, %s719_s18   ;;  %s555_s17 = sphi %s606_s17, %s718_s17  }
  0x14   : > { %p36_p5 = scmp.ge.s32.totalorder %s34_s23, 4  ;;  %s69_s24 = sadd.s32 1, %s563_s0 }
  0x15   : > { %p76_p6 = scmp.ne.s32.totalorder %s563_s0, %s559_s18  ;;  %p77_p7 = scmp.eq.s32.totalorder %s575_s21, 0 }
  0x16   : > { %s724_s23 = smov (%p36_p5, %s34_s23), 0  ;;  %p82_p9 = scmp.ne.s32.totalorder %s559_s18, %s555_s17 }
  0x17   : > { %p642_p8 = por %p77_p7, %p76_p6  ;;  %s66_s26 = ssub.s32 %s571_s20, %s724_s23 }
  0x18   : > { %p83_p10 = scmp.eq.s32.totalorder %s391_s22, 0  ;;  %p67_p11 = scmp.eq.s32.totalorder %s66_s26, 0 }
  0x19   : > { %p425_p13 = scmp.lt.s32.totalorder %s575_s21, 4  ;;  %s144_s29 = sand.u32 1, %s563_s0  }
  0x1a   : > { %p649_p12 = por %p83_p10, %p82_p9  ;;  %s407_s30 = sshll.u32 %s571_s20, 8 }
  0x1b   : > { %s655_s28 = scalar_select %p67_p11, %s563_s0, %s69_s24  }
  0x1c   : > { %s395_s4 = sshll.u32 %s144_s29, 4  ;;  %s154_s7 = scalar_lea.hbm %s713_s2, %s407_s30 }
  0x1d   : > { %s148_s8 = scalar_lea.vmem [#allocation4], %s395_s4  ;;  %p664_p0 = pnand %p425_p13, %p642_p8 }
  0x1e   : > { %s155_s9 = sshll.u32 %s148_s8, 4  ;;  %s145_s11 = scalar_lea.sflag [#allocation5], %s144_s29  ;;  %s156_s9 = int_to_ptr.vmem [resolvable:$true] %s155_s9 }
  0x1f   : > { %p497_p1 = pneg %p664_p0  ;;  %s508_s12 = scalar_lea.vmem %s156_s9, 256 }
  0x20   : > { %p509_p2 = scmp.ne.s32.totalorder %s156_s9, %s508_s12  ;;  %s578_s13 = smov [#allocation4]  }
  0x21   : > { %s513_s14 = sshll.u32 %s578_s13, 4  ;;  %s514_s14 = int_to_ptr.vmem [resolvable:$false] %s513_s14 }
  0x22   : > { %p511_p3 = pnand %p509_p2, %p497_p1  ;;  %s515_s15 = scalar_lea.vmem %s514_s14, 512 }
  0x23   : > { %p516_p5 = scmp.lt.s32.totalorder %s156_s9, %s514_s14  ;;  %p517_p6 = scmp.lt.s32.totalorder %s515_s15, %s508_s12 }
  0x24   : > { %p512_p4 = pneg %p511_p3 }
  0x25   : > { %p518_p7 = por %p517_p6, %p516_p5 }
  0x27   : > { %p519_p8 = pnand %p518_p7, %p512_p4 }
  0x29   : > { %522 = shalt.err (!%p519_p8)
}
  0x2a   : > { %s579_s16 = smov 64   ;;  %s580_s17 = smov 4  }
  0x2b   : > { %424 = dma.hbm_to_vmem [thread:$0]  (!%p664_p0), %s154_s7, 256, %s156_s9, %s145_s11, %s579_s16, %s579_s16, %s580_s17  }
  0x2c   : > { %p398_p9 = scmp.ge.s32.totalorder %s575_s21, 1  ;;  %p163_p10 = scmp.lt.s32.totalorder %s575_s21, 5 }
  0x2e   : > { %p164_p11 = pnand %p398_p9, %p163_p10 }
  0x2f   : > { %s169_s22 = sand.u32 (!%p164_p11), 1, %s559_s18  }
  0x30   : > { %167 = sbr.rel (%p164_p11) target bundleno = 417 (0x1a1), region = 28  ;;  %s399_s24 = sshll.u32 (!%p164_p11), %s169_s22, 4 }
  0x31   : > { %s170_s25 = scalar_lea.sflag (!%p164_p11), [#allocation5], %s169_s22  ;;  %s173_s26 = scalar_lea.vmem (!%p164_p11), [#allocation4], %s399_s24 }
  0x35   : > { %550 = dma.done.wait (%p649_p12), %s170_s25, 256  }
  0x36   : > { %552 = vsyncadd (%p649_p12), %s170_s25, 4294967040  ;;  %p203_p13 = scmp.lt.s32.totalorder %s567_s19, 3  ;;  %v581_v0 = vmov 0.0   ;;  %vm582_vm0 = vmmov 0   ;;  %v479_v1 = vld [vmem:[%s173_s26 + $0x8] sm:$0xff]   ;;  %v480_v2 = vld [vmem:[%s173_s26] sm:$0xff]  }
  0x37   : > { %411 = vmatprep.subr.bf16.mxu0 %v581_v0  ;;  %415 = vmatprep.mubr.msk.bf16.mxu0 %vm582_vm0, %v581_v0  ;;  %vm236_vm1 = vcmask 261120   ;;  %vm281_vm2 = vcmask 523264   ;;  %s288_s27 = sld [smem:[#allocation3 + %s567_s19]] }
  0x38   : > { %s681_s29 = scalar_select %p203_p13, %s567_s19, 3  ;;  %412 = vmatpush3.bf16.msra.mxu0 %v479_v1 }
  0x39   : > { %413 = vmatprep.subr.bf16.mxu0 %v581_v0 }
  0x3a   : > { %s400_s30 = sshll.u32 %s681_s29, 3 }
  0x3b   : > { %s209_s6 = scalar_lea.vmem %s712_s1, %s400_s30  ;;  %s216_s9 = scalar_lea.vmem %s714_s3, %s400_s30 }
  0x3c   : > { %v218_v3 = vld [vmem:[%s209_s6] sm:$0xff]  ;;  %414 = vmatpush3.bf16.msra.mxu0 %v480_v2 }
  0x3d   : > { %v219_v4 = vpack.c.bf16 %v218_v3, %v218_v3  ;;  %v289_v12 = vstv %s288_s27 }
  0x3f   : > { %416 = vmatmul.mubr.msk.bf16.vlgmr.msra.gmra.mxu0 %vm236_vm1, %v219_v4 }
  0xff   : > { %v274_v5 = vpop.f32.mrf.mxu0 }
 0x100   : > { %v280_v6 = vmul.f32 %v274_v5, %v274_v5 }
 0x101   : > { %v417_v7 = vpop.f32.mrf.mxu0 }
 0x102   : > { %v282_v8 = vsel %vm281_vm2, %v280_v6, 0.0 }
 0x103   : > { %v277_v9 = vpop.f32.mrf.mxu0  ;;  %283 = vadd.xlane.f32.xlu0 %v282_v8 }
 0x105   : > { %v418_v10 = vpop.f32.mrf.mxu0 }
 0x18c   : > { %v284_v11 = vpop.xlane.xlu0 %283 }
 0x18d   : > { %481 = vrsqrt.f32 %v284_v11  ;;  %vm285_vm3 = vcmp.gt.f32.partialorder %v284_v11, 0.0 }
 0x19a   : > { %v482_v13 = vpop.eup %481 }
 0x19b   : > { %v287_v14 = vsel %vm285_vm3, %v482_v13, 0.0 }
 0x19c   : > { %v290_v15 = vmul.f32 %v289_v12, %v287_v14 }
 0x19e   : > { %v291_v16 = vmul.f32 %v290_v15, %v274_v5 }
 0x1a0   : > { %292 = vst.msk [vmem:[%s216_s9] sm:$0xff] %vm281_vm2, %v291_v16 }
 0x1a1 PF: > { %s22_s21 = sadd.s32 1, %s575_s21   ;;  %s718_s17 = smov %s559_s18 }
 0x1a2   : > { %p19_p12 = scmp.ge.s32.totalorder %s22_s21, 6   ;;  %s719_s18 = smov %s563_s0 }
 0x1a3   : > { %s720_s0 = smov %s655_s28  ;;  %s721_s19 = smov %s571_s20 }
 0x1a4   : > { %s722_s20 = smov %s724_s23  ;;  %21 = sbr.rel (!%p19_p12) target bundleno = 19 (0x13), region = 71 }
 0x1a9   :  { %318 = vsyncpa [#allocation5], 1 }
 0x1aa   :  { %320 = vsyncpa [#allocation5 + $0x1], 1 }

</bundles_post_ra>
